<compile_context>
chip_gen: v6e
topology: v6e:2x2x1
jax: 0.10.0
libtpu: 0.0.40
codegen_flags: <defaults>
</compile_context>

<pallas_src>
import functools

import jax
import jax.numpy as jnp
from jax import lax
from jax.experimental import pallas as pl
from jax.experimental.pallas import tpu as pltpu


_CHUNK = 8  # sublane-tile sized channel sub-chunk kept resident in vregs


def _dw_xcorr_kernel(z_ref, x_ref, o_ref, xpad_ref, *, hz, wz, wx):
    """Depthwise cross-correlation for one (batch, channel-tile) block.

    z_ref   : (1, Ct, hz*wz)  template taps
    x_ref   : (1, Ct, hw)     flattened (unpadded) search features
    o_ref   : (1, Ct, hw)     "inflated" response map; the valid output value
                              out[i, j] lives at lane i*wx + j (the wrapper
                              slices to (:ho, :wo)); other lanes are garbage.
    xpad_ref: (chunk, lp)     f32 lane-padded staging scratch, lp % 128 == 0
    """
    ct = x_ref.shape[1]
    hw = x_ref.shape[-1]
    chunk = xpad_ref.shape[0]
    lp = xpad_ref.shape[-1]
    n_chunks = ct // chunk

    # Zero once per grid step so the lane-padding tail is never NaN/Inf
    # garbage.  (Pad lanes are only ever read by discarded output lanes.)
    xpad_ref[...] = jnp.zeros_like(xpad_ref)

    def body(j, carry):
        c0 = pl.multiple_of(j * chunk, chunk)

        # Stage this channel chunk into the lane-padded scratch; lanes past
        # hw stay zero.  Then work on the lane-dense (chunk, lp) slab.
        xpad_ref[:, :hw] = x_ref[0, pl.ds(c0, chunk), :].astype(jnp.float32)
        x_chunk = xpad_ref[...]                                       # (chunk, lp)
        z_chunk = z_ref[0, pl.ds(c0, chunk), :].astype(jnp.float32)   # (chunk, kz)

        # f32 accumulator: chunk*lp/1024 vregs, resident across all taps,
        # written back exactly once.
        acc = jnp.zeros((chunk, lp), jnp.float32)
        for u in range(hz):                    # short fixed tap loop: unrolled
            for v in range(wz):
                off = u * wx + v               # flat spatial shift
                if off == 0:
                    shifted = x_chunk
                else:
                    # Cyclic roll by -off brings x[..., l + off] to lane l.
                    # Valid output lanes satisfy l + off <= hw - 1, so the
                    # wrap-around / pad lanes never reach a valid output.
                    shifted = pltpu.roll(x_chunk, shift=lp - off, axis=1)
                # Explicit lane broadcast, once per (chunk, tap).
                k = u * wz + v
                zk = jnp.broadcast_to(z_chunk[:, k:k + 1], (chunk, lp))
                acc = acc + shifted * zk
        o_ref[0, pl.ds(c0, chunk), :] = acc[:, :hw].astype(o_ref.dtype)
        return carry

    lax.fori_loop(0, n_chunks, body, 0)


def _choose_channel_tile(c, hw, b):
    """Channel tile Ct for the (1, Ct, hw) x/out blocks.

    Sized against VMEM (not the vreg file): ~1 MiB of f32 per block buffer
    keeps the double-buffered x + out (+ tiny z + scratch) footprint around
    4-5 MiB — well under the default scoped VMEM limit on v5e (16 MiB) and
    v6e/v7x (32 MiB), and far under v7x's 64 MiB physical VMEM.  Ct must
    divide C and (BlockSpec sublane rule) be a multiple of 8 or equal C.
    When batch == 1, Ct is capped at C//2 so the grid keeps >= 2 parallel
    blocks for the two TensorCores of a v7x megacore (no-op on v5e/v6e).
    """
    budget_elems = (1 << 20) // 4               # ~1 MiB of f32 per buffer
    cap = max(8, budget_elems // max(hw, 1))
    if b == 1 and c >= 16:
        cap = min(cap, c // 2)
    cap = min(cap, c)
    for ct in range(cap, 0, -1):
        if c % ct == 0 and (ct % 8 == 0 or ct == c):
            return ct
    return c  # fallback for pathological C; legal, may exceed the budget


def rpn_forward(z_f, x_f):
    """RPN depthwise cross-correlation.

    z_f: (B, C, Hz, Wz)  template features (NCHW, PyTorch convention)
    x_f: (B, C, Hx, Wx)  search features   (NCHW)
    returns (B, C, Ho, Wo) with Ho = Hx - Hz + 1, Wo = Wx - Wz + 1.
    """
    b, c, hz, wz = z_f.shape
    bx, cx, hx, wx = x_f.shape
    assert b == bx and c == cx
    ho, wo = hx - hz + 1, wx - wz + 1
    assert ho > 0 and wo > 0

    hw = hx * wx
    kz = hz * wz
    lp = ((hw + 127) // 128) * 128      # lane-padded in-kernel working width

    # Roll-wrap safety (documented per review): the largest valid output lane
    # plus the largest tap shift lands exactly on hw-1, so neither the cyclic
    # wrap nor the pad-lane contents can ever reach a kept output position.
    assert (ho - 1) * wx + (wo - 1) + (hz - 1) * wx + (wz - 1) == hw - 1

    # Row-major collapses are free; NO wrapper-side padding (handled in-kernel).
    x_flat = x_f.reshape(b, c, hw)
    z_flat = z_f.reshape(b, c, kz)

    ct = _choose_channel_tile(c, hw, b)
    chunk = next(d for d in (_CHUNK, 4, 2, 1) if ct % d == 0)

    kernel = functools.partial(_dw_xcorr_kernel, hz=hz, wz=wz, wx=wx)

    out_flat = pl.pallas_call(
        kernel,
        out_shape=jax.ShapeDtypeStruct((b, c, hw), x_f.dtype),
        grid_spec=pltpu.PrefetchScalarGridSpec(
            num_scalar_prefetch=0,
            grid=(b, c // ct),
            in_specs=[
                pl.BlockSpec((1, ct, kz), lambda bi, ci: (bi, ci, 0)),
                pl.BlockSpec((1, ct, hw), lambda bi, ci: (bi, ci, 0)),
            ],
            out_specs=pl.BlockSpec((1, ct, hw), lambda bi, ci: (bi, ci, 0)),
            scratch_shapes=[pltpu.VMEM((chunk, lp), jnp.float32)],
        ),
        compiler_params=pltpu.CompilerParams(
            dimension_semantics=("parallel", "parallel")),
    )(z_flat, x_flat)

    # TODO(synk): this final slice is a separate (small) XLA pass; skip it when
    # the downstream conv head can index the inflated (hx, wx) map directly.
    return out_flat.reshape(b, c, hx, wx)[:, :, :ho, :wo]


def _reference(z_f, x_f):
    """Plain-JAX reference: per-batch depthwise (grouped) cross-correlation."""
    b, c, hz, wz = z_f.shape
    outs = []
    for i in range(b):
        lhs = x_f[i:i + 1]                      # (1, C, Hx, Wx)
        rhs = z_f[i].reshape(c, 1, hz, wz)      # (C, 1, Hz, Wz)
        o = lax.conv_general_dilated(
            lhs, rhs, window_strides=(1, 1), padding="VALID",
            dimension_numbers=("NCHW", "OIHW", "NCHW"),
            feature_group_count=c)
        outs.append(o)
    return jnp.concatenate(outs, axis=0)


if __name__ == "__main__":
    key = jax.random.PRNGKey(0)
    kz_key, kx_key = jax.random.split(key)

    B, C = 2, 32
    Hz, Wz = 4, 4
    Hx, Wx = 8, 8

    z_f = jax.random.normal(kz_key, (B, C, Hz, Wz), dtype=jnp.float32)
    x_f = jax.random.normal(kx_key, (B, C, Hx, Wx), dtype=jnp.float32)

    out = rpn_forward(z_f, x_f)
    out = jax.block_until_ready(out)

    ref = _reference(z_f, x_f)
    assert out.shape == ref.shape, (out.shape, ref.shape)
    assert jnp.allclose(out, ref, atol=1e-4, rtol=1e-4), "mismatch vs reference"

    print("KERNEL_OK")
</pallas_src>

<mosaic_0001>
module attributes {stable_mosaic.version = 11 : i64} {
  func.func @_dw_xcorr_kernel(%arg0: i32, %arg1: i32, %arg2: memref<1x32x16xf32, #tpu.memory_space<vmem>>, %arg3: memref<1x32x64xf32, #tpu.memory_space<vmem>>, %arg4: memref<1x32x64xf32, #tpu.memory_space<vmem>>, %arg5: memref<8x128xf32, #tpu.memory_space<vmem>>) attributes {dimension_semantics = [#tpu.dimension_semantics<parallel>, #tpu.dimension_semantics<parallel>], iteration_bounds = array<i64: 2, 1>, scalar_prefetch = 0 : i64, scratch_operands = 1 : i64, tpu.core_type = #tpu.core_type<tc>, window_params = [{transform_indices = @transform_0, window_bounds = array<i64: 1, 32, 16>}, {transform_indices = @transform_1, window_bounds = array<i64: 1, 32, 64>}, {transform_indices = @transform_2, window_bounds = array<i64: 1, 32, 64>}]} {
    %cst = arith.constant 0.000000e+00 : f32
    %0 = vector.broadcast %cst : f32 to vector<8x128xf32>
    %c0 = arith.constant 0 : index
    %c0_0 = arith.constant 0 : index
    %1 = vector.load %arg5[%c0, %c0_0] : memref<8x128xf32, #tpu.memory_space<vmem>>, vector<8x128xf32>
    tpu.vector_store %arg5[%c0, %c0_0], %0 {strides = array<i32>} : memref<8x128xf32, #tpu.memory_space<vmem>>, vector<8x128xf32>,
    %c0_i32 = arith.constant 0 : i32
    %c4_i32 = arith.constant 4 : i32
    %2 = arith.addi %c0_i32, %c4_i32 : i32
    %c1_i32 = arith.constant 1 : i32
    scf.for %arg6 = %c0_i32 to %2 step %c1_i32  : i32 {
      %c8_i32 = arith.constant 8 : i32
      %3 = arith.muli %arg6, %c8_i32 : i32
      %4 = tpu.assume_multiple %3, 8 : i32
      %c0_2 = arith.constant 0 : index
      %5 = arith.index_cast %4 : i32 to index
      %c0_3 = arith.constant 0 : index
      %6 = vector.load %arg3[%c0_2, %5, %c0_3] : memref<1x32x64xf32, #tpu.memory_space<vmem>>, vector<1x8x64xf32>
      %7 = vector.shape_cast %6 : vector<1x8x64xf32> to vector<8x64xf32>
      %c0_4 = arith.constant 0 : index
      %c0_5 = arith.constant 0 : index
      %8 = vector.load %arg5[%c0_4, %c0_5] : memref<8x128xf32, #tpu.memory_space<vmem>>, vector<8x64xf32>
      tpu.vector_store %arg5[%c0_4, %c0_5], %7 {strides = array<i32>} : memref<8x128xf32, #tpu.memory_space<vmem>>, vector<8x64xf32>,
      %c0_6 = arith.constant 0 : index
      %c0_7 = arith.constant 0 : index
      %9 = vector.load %arg5[%c0_6, %c0_7] : memref<8x128xf32, #tpu.memory_space<vmem>>, vector<8x128xf32>
      %c0_8 = arith.constant 0 : index
      %10 = arith.index_cast %4 : i32 to index
      %c0_9 = arith.constant 0 : index
      %11 = vector.load %arg2[%c0_8, %10, %c0_9] : memref<1x32x16xf32, #tpu.memory_space<vmem>>, vector<1x8x16xf32>
      %12 = vector.shape_cast %11 : vector<1x8x16xf32> to vector<8x16xf32>
      %cst_10 = arith.constant 0.000000e+00 : f32
      %13 = vector.broadcast %cst_10 : f32 to vector<8x128xf32>
      %14 = vector.extract_strided_slice %12 {offsets = [0, 0], sizes = [8, 1], strides = [1, 1]} : vector<8x16xf32> to vector<8x1xf32>
      %15 = vector.shape_cast %14 : vector<8x1xf32> to vector<8x1xf32>
      %16 = vector.broadcast %15 : vector<8x1xf32> to vector<8x128xf32>
      %17 = arith.mulf %9, %16 : vector<8x128xf32>
      %18 = arith.addf %13, %17 : vector<8x128xf32>
      %c127_i32 = arith.constant 127 : i32
      %19 = tpu.dynamic_rotate %9 by %c127_i32 dim 1 : vector<8x128xf32>, i32 -> vector<8x128xf32>
      %20 = vector.extract_strided_slice %12 {offsets = [0, 1], sizes = [8, 1], strides = [1, 1]} : vector<8x16xf32> to vector<8x1xf32>
      %21 = vector.shape_cast %20 : vector<8x1xf32> to vector<8x1xf32>
      %22 = vector.broadcast %21 : vector<8x1xf32> to vector<8x128xf32>
      %23 = arith.mulf %19, %22 : vector<8x128xf32>
      %24 = arith.addf %18, %23 : vector<8x128xf32>
      %c126_i32 = arith.constant 126 : i32
      %25 = tpu.dynamic_rotate %9 by %c126_i32 dim 1 : vector<8x128xf32>, i32 -> vector<8x128xf32>
      %26 = vector.extract_strided_slice %12 {offsets = [0, 2], sizes = [8, 1], strides = [1, 1]} : vector<8x16xf32> to vector<8x1xf32>
      %27 = vector.shape_cast %26 : vector<8x1xf32> to vector<8x1xf32>
      %28 = vector.broadcast %27 : vector<8x1xf32> to vector<8x128xf32>
      %29 = arith.mulf %25, %28 : vector<8x128xf32>
      %30 = arith.addf %24, %29 : vector<8x128xf32>
      %c125_i32 = arith.constant 125 : i32
      %31 = tpu.dynamic_rotate %9 by %c125_i32 dim 1 : vector<8x128xf32>, i32 -> vector<8x128xf32>
      %32 = vector.extract_strided_slice %12 {offsets = [0, 3], sizes = [8, 1], strides = [1, 1]} : vector<8x16xf32> to vector<8x1xf32>
      %33 = vector.shape_cast %32 : vector<8x1xf32> to vector<8x1xf32>
      %34 = vector.broadcast %33 : vector<8x1xf32> to vector<8x128xf32>
      %35 = arith.mulf %31, %34 : vector<8x128xf32>
      %36 = arith.addf %30, %35 : vector<8x128xf32>
      %c120_i32 = arith.constant 120 : i32
      %37 = tpu.dynamic_rotate %9 by %c120_i32 dim 1 : vector<8x128xf32>, i32 -> vector<8x128xf32>
      %38 = vector.extract_strided_slice %12 {offsets = [0, 4], sizes = [8, 1], strides = [1, 1]} : vector<8x16xf32> to vector<8x1xf32>
      %39 = vector.shape_cast %38 : vector<8x1xf32> to vector<8x1xf32>
      %40 = vector.broadcast %39 : vector<8x1xf32> to vector<8x128xf32>
      %41 = arith.mulf %37, %40 : vector<8x128xf32>
      %42 = arith.addf %36, %41 : vector<8x128xf32>
      %c119_i32 = arith.constant 119 : i32
      %43 = tpu.dynamic_rotate %9 by %c119_i32 dim 1 : vector<8x128xf32>, i32 -> vector<8x128xf32>
      %44 = vector.extract_strided_slice %12 {offsets = [0, 5], sizes = [8, 1], strides = [1, 1]} : vector<8x16xf32> to vector<8x1xf32>
      %45 = vector.shape_cast %44 : vector<8x1xf32> to vector<8x1xf32>
      %46 = vector.broadcast %45 : vector<8x1xf32> to vector<8x128xf32>
      %47 = arith.mulf %43, %46 : vector<8x128xf32>
      %48 = arith.addf %42, %47 : vector<8x128xf32>
      %c118_i32 = arith.constant 118 : i32
      %49 = tpu.dynamic_rotate %9 by %c118_i32 dim 1 : vector<8x128xf32>, i32 -> vector<8x128xf32>
      %50 = vector.extract_strided_slice %12 {offsets = [0, 6], sizes = [8, 1], strides = [1, 1]} : vector<8x16xf32> to vector<8x1xf32>
      %51 = vector.shape_cast %50 : vector<8x1xf32> to vector<8x1xf32>
      %52 = vector.broadcast %51 : vector<8x1xf32> to vector<8x128xf32>
      %53 = arith.mulf %49, %52 : vector<8x128xf32>
      %54 = arith.addf %48, %53 : vector<8x128xf32>
      %c117_i32 = arith.constant 117 : i32
      %55 = tpu.dynamic_rotate %9 by %c117_i32 dim 1 : vector<8x128xf32>, i32 -> vector<8x128xf32>
      %56 = vector.extract_strided_slice %12 {offsets = [0, 7], sizes = [8, 1], strides = [1, 1]} : vector<8x16xf32> to vector<8x1xf32>
      %57 = vector.shape_cast %56 : vector<8x1xf32> to vector<8x1xf32>
      %58 = vector.broadcast %57 : vector<8x1xf32> to vector<8x128xf32>
      %59 = arith.mulf %55, %58 : vector<8x128xf32>
      %60 = arith.addf %54, %59 : vector<8x128xf32>
      %c112_i32 = arith.constant 112 : i32
      %61 = tpu.dynamic_rotate %9 by %c112_i32 dim 1 : vector<8x128xf32>, i32 -> vector<8x128xf32>
      %62 = vector.extract_strided_slice %12 {offsets = [0, 8], sizes = [8, 1], strides = [1, 1]} : vector<8x16xf32> to vector<8x1xf32>
      %63 = vector.shape_cast %62 : vector<8x1xf32> to vector<8x1xf32>
      %64 = vector.broadcast %63 : vector<8x1xf32> to vector<8x128xf32>
      %65 = arith.mulf %61, %64 : vector<8x128xf32>
      %66 = arith.addf %60, %65 : vector<8x128xf32>
      %c111_i32 = arith.constant 111 : i32
      %67 = tpu.dynamic_rotate %9 by %c111_i32 dim 1 : vector<8x128xf32>, i32 -> vector<8x128xf32>
      %68 = vector.extract_strided_slice %12 {offsets = [0, 9], sizes = [8, 1], strides = [1, 1]} : vector<8x16xf32> to vector<8x1xf32>
      %69 = vector.shape_cast %68 : vector<8x1xf32> to vector<8x1xf32>
      %70 = vector.broadcast %69 : vector<8x1xf32> to vector<8x128xf32>
      %71 = arith.mulf %67, %70 : vector<8x128xf32>
      %72 = arith.addf %66, %71 : vector<8x128xf32>
      %c110_i32 = arith.constant 110 : i32
      %73 = tpu.dynamic_rotate %9 by %c110_i32 dim 1 : vector<8x128xf32>, i32 -> vector<8x128xf32>
      %74 = vector.extract_strided_slice %12 {offsets = [0, 10], sizes = [8, 1], strides = [1, 1]} : vector<8x16xf32> to vector<8x1xf32>
      %75 = vector.shape_cast %74 : vector<8x1xf32> to vector<8x1xf32>
      %76 = vector.broadcast %75 : vector<8x1xf32> to vector<8x128xf32>
      %77 = arith.mulf %73, %76 : vector<8x128xf32>
      %78 = arith.addf %72, %77 : vector<8x128xf32>
      %c109_i32 = arith.constant 109 : i32
      %79 = tpu.dynamic_rotate %9 by %c109_i32 dim 1 : vector<8x128xf32>, i32 -> vector<8x128xf32>
      %80 = vector.extract_strided_slice %12 {offsets = [0, 11], sizes = [8, 1], strides = [1, 1]} : vector<8x16xf32> to vector<8x1xf32>
      %81 = vector.shape_cast %80 : vector<8x1xf32> to vector<8x1xf32>
      %82 = vector.broadcast %81 : vector<8x1xf32> to vector<8x128xf32>
      %83 = arith.mulf %79, %82 : vector<8x128xf32>
      %84 = arith.addf %78, %83 : vector<8x128xf32>
      %c104_i32 = arith.constant 104 : i32
      %85 = tpu.dynamic_rotate %9 by %c104_i32 dim 1 : vector<8x128xf32>, i32 -> vector<8x128xf32>
      %86 = vector.extract_strided_slice %12 {offsets = [0, 12], sizes = [8, 1], strides = [1, 1]} : vector<8x16xf32> to vector<8x1xf32>
      %87 = vector.shape_cast %86 : vector<8x1xf32> to vector<8x1xf32>
      %88 = vector.broadcast %87 : vector<8x1xf32> to vector<8x128xf32>
      %89 = arith.mulf %85, %88 : vector<8x128xf32>
      %90 = arith.addf %84, %89 : vector<8x128xf32>
      %c103_i32 = arith.constant 103 : i32
      %91 = tpu.dynamic_rotate %9 by %c103_i32 dim 1 : vector<8x128xf32>, i32 -> vector<8x128xf32>
      %92 = vector.extract_strided_slice %12 {offsets = [0, 13], sizes = [8, 1], strides = [1, 1]} : vector<8x16xf32> to vector<8x1xf32>
      %93 = vector.shape_cast %92 : vector<8x1xf32> to vector<8x1xf32>
      %94 = vector.broadcast %93 : vector<8x1xf32> to vector<8x128xf32>
      %95 = arith.mulf %91, %94 : vector<8x128xf32>
      %96 = arith.addf %90, %95 : vector<8x128xf32>
      %c102_i32 = arith.constant 102 : i32
      %97 = tpu.dynamic_rotate %9 by %c102_i32 dim 1 : vector<8x128xf32>, i32 -> vector<8x128xf32>
      %98 = vector.extract_strided_slice %12 {offsets = [0, 14], sizes = [8, 1], strides = [1, 1]} : vector<8x16xf32> to vector<8x1xf32>
      %99 = vector.shape_cast %98 : vector<8x1xf32> to vector<8x1xf32>
      %100 = vector.broadcast %99 : vector<8x1xf32> to vector<8x128xf32>
      %101 = arith.mulf %97, %100 : vector<8x128xf32>
      %102 = arith.addf %96, %101 : vector<8x128xf32>
      %c101_i32 = arith.constant 101 : i32
      %103 = tpu.dynamic_rotate %9 by %c101_i32 dim 1 : vector<8x128xf32>, i32 -> vector<8x128xf32>
      %104 = vector.extract_strided_slice %12 {offsets = [0, 15], sizes = [8, 1], strides = [1, 1]} : vector<8x16xf32> to vector<8x1xf32>
      %105 = vector.shape_cast %104 : vector<8x1xf32> to vector<8x1xf32>
      %106 = vector.broadcast %105 : vector<8x1xf32> to vector<8x128xf32>
      %107 = arith.mulf %103, %106 : vector<8x128xf32>
      %108 = arith.addf %102, %107 : vector<8x128xf32>
      %109 = vector.extract_strided_slice %108 {offsets = [0, 0], sizes = [8, 64], strides = [1, 1]} : vector<8x128xf32> to vector<8x64xf32>
      %c0_11 = arith.constant 0 : index
      %110 = arith.index_cast %4 : i32 to index
      %c0_12 = arith.constant 0 : index
      %111 = vector.load %arg4[%c0_11, %110, %c0_12] : memref<1x32x64xf32, #tpu.memory_space<vmem>>, vector<1x8x64xf32>
      %112 = vector.shape_cast %111 : vector<1x8x64xf32> to vector<8x64xf32>
      %113 = vector.shape_cast %109 : vector<8x64xf32> to vector<1x8x64xf32>
      tpu.vector_store %arg4[%c0_11, %110, %c0_12], %113 {strides = array<i32>} : memref<1x32x64xf32, #tpu.memory_space<vmem>>, vector<1x8x64xf32>,
    }
    %c4_i32_1 = arith.constant 4 : i32
    return
  }
  func.func @transform_0(%arg0: i32, %arg1: i32) -> (i32, i32, i32) {
    %c0_i32 = arith.constant 0 : i32
    %c0_i32_0 = arith.constant 0 : i32
    return %arg0, %arg1, %c0_i32 : i32, i32, i32
  }
  func.func @transform_1(%arg0: i32, %arg1: i32) -> (i32, i32, i32) {
    %c0_i32 = arith.constant 0 : i32
    %c0_i32_0 = arith.constant 0 : i32
    return %arg0, %arg1, %c0_i32 : i32, i32, i32
  }
  func.func @transform_2(%arg0: i32, %arg1: i32) -> (i32, i32, i32) {
    %c0_i32 = arith.constant 0 : i32
    %c0_i32_0 = arith.constant 0 : i32
    return %arg0, %arg1, %c0_i32 : i32, i32, i32
  }
}

</mosaic_0001>

<bundles_post_ra>
// kernel: tpu_custom_call.1
= control target key start
LH: loop header
LB: loop body
LE: loop exit
PB: predicated region body
PF: predicated region fallthrough
CT: control target
= control target key end

     0   :  { %7 = vsyncpa [#allocation4], 0  ;;  %s932_s0 = inlined_call_operand.vmem [shape: f32[2,32,16], index: 0, kind: input, shape index: {}]   ;;  %s933_s1 = inlined_call_operand.vmem [shape: f32[2,32,64], index: 1, kind: input, shape index: {}]   ;;  %s934_s2 = inlined_call_operand.hbm [shape: f32[2,32,64], index: 2, kind: output, shape index: {}]  }
   0x1   :  { %9 = vsyncpa [#allocation4 + $0x1], 0  ;;  %s746_s9 = smov 0   ;;  %s748_s10 = smov 0  }
   0x2   :  { %s750_s11 = smov 0   ;;  %s752_s12 = smov 0  }
   0x3   :  { %s754_s13 = smov 0   ;;  %s756_s14 = smov 0  }
   0x4 LB: > { %s477_s15 = sadd.s32 4294967295, %s690_s14   ;;  %s478_s16 = sadd.s32 4294967294, %s690_s14   ;;  %s690_s14 = sphi %s756_s14, %s15_s14   ;;  %s686_s13 = sphi %s754_s13, %s941_s13   ;;  %s682_s12 = sphi %s752_s12, %s940_s12   ;;  %s678_s11 = sphi %s750_s11, %s939_s11   ;;  %s674_s10 = sphi %s748_s10, %s938_s10   ;;  %s670_s9 = sphi %s746_s9, %s937_s9  }
   0x5   : > { %s27_s17 = sadd.s32 1, %s686_s13  ;;  %s92_s18 = sadd.s32 1, %s678_s11 }
   0x6   : > { %p29_p0 = scmp.ge.s32.totalorder %s27_s17, 2  ;;  %p102_p1 = scmp.ne.s32.totalorder %s678_s11, %s674_s10 }
   0x7   : > { %p103_p2 = scmp.eq.s32.totalorder %s477_s15, 1  ;;  %p108_p3 = scmp.ne.s32.totalorder %s674_s10, %s670_s9 }
   0x8   : > { %s943_s17 = smov (%p29_p0, %s27_s17), 0  ;;  %p109_p5 = scmp.eq.s32.totalorder %s478_s16, 1 }
   0x9   : > { %p786_p4 = por %p103_p2, %p102_p1  ;;  %s87_s20 = ssub.s32 %s686_s13, %s943_s17 }
   0xa   : > { %p481_p6 = scmp.ge.s32.totalorder %s690_s14, 1  ;;  %p90_p7 = scmp.eq.s32.totalorder %s87_s20, 0 }
   0xb   : > { %p793_p8 = por %p109_p5, %p108_p3  ;;  %p153_p9 = scmp.lt.s32.totalorder %s690_s14, 3 }
   0xc   : > { %s799_s22 = scalar_select %p90_p7, %s678_s11, %s92_s18  }
   0xd   : > { %p154_p10 = pnand %p481_p6, %p153_p9 }
   0xe   : > { %s185_s23 = sand.u32 (!%p154_p10), 1, %s674_s10   ;;  %p189_p11 = scmp.lt.s32.totalorder (!%p154_p10), %s682_s12, 1 }
   0xf   : > { %157 = sbr.rel (%p154_p10) target bundleno = 242 (0xf2), region = 28  ;;  %s805_s24 = sshll.u32 (!%p154_p10), %s185_s23, 5 }
  0x10   : > { %s187_s5 = scalar_lea.vmem (!%p154_p10), [#allocation3], %s805_s24  ;;  %s819_s6 = smov (!%p154_p10), 0  }
  0x14   : > { %v696_v0 = vmov 0.0   ;;  %s190_s25 = scalar_select %p189_p11, %s682_s12, 1 }
  0x15   : > { %209 = vst [vmem:[#allocation2] sm:$0xff] %v696_v0 }
  0x16   : > { %s493_s26 = sshll.u32 %s190_s25, 5 }
  0x17   : > { %s811_s29 = scalar_lea.vmem %s932_s0, %s493_s26  ;;  %s816_s4 = scalar_lea.vmem %s933_s1, %s493_s26 }
  0x18 LB: >> { %v697_v1 = vmov 2   ;;  %v698_v2 = vmov 0   ;;  %s825_s7 = sshll.u32 %s694_s6, 3  ;;  %vm219_vm0 = vcmask 523264   ;;  %v699_v5 = vmov 3   ;;  %s702_s16 = smov 127   ;;  %s694_s6 = sphi %s819_s6, %s215_s6  }
  0x19   : >> { %595 = vset.pattern.permute.xlu1 %v697_v1  ;;  %593 = vset.pattern.permute.xlu0 %v698_v2  ;;  %s222_s8 = scalar_lea.vmem %s811_s29, %s825_s7  ;;  %s217_s15 = scalar_lea.vmem %s816_s4, %s825_s7  ;;  %v700_v6 = vmov 1   ;;  %v701_v8 = vmov 4   ;;  %v703_v9 = vmov 5   ;;  %v706_v10 = vmov 15  }
  0x1a   : >> { %v831_v3 = vld [vmem:[%s222_s8] sm:$0xff]  ;;  %s704_s18 = smov 126   ;;  %s705_s20 = smov 125   ;;  %v708_v11 = vmov 6   ;;  %v710_v12 = vmov 7   ;;  %v713_v13 = vmov 8  }
  0x1b   : >> { %v218_v4 = vld [vmem:[%s217_s15] sm:$0xff]  ;;  %242 = vperm.xlu1 %595, %v831_v3   ;;  %226 = vperm.xlu0 %593, %v831_v3   ;;  %s707_s25 = smov 120   ;;  %s709_s26 = smov 119   ;;  %v715_v14 = vmov 9   ;;  %v717_v15 = vmov 10   ;;  %v719_v16 = vmov 11  }
  0x1c   : >> { %220 = vst.msk [vmem:[#allocation2] sm:$0xff] %vm219_vm0, %v218_v4  ;;  %s711_s27 = smov 118   ;;  %s712_s28 = smov 117   ;;  %v722_v17 = vmov 12   ;;  %v724_v18 = vmov 13   ;;  %v726_v19 = vmov 14  }
  0x1d   : >> { %s714_s30 = smov 112   ;;  %s716_s3 = smov 111  }
  0x1e   : >> { %s718_s8 = smov 110   ;;  %s720_s15 = smov 109  }
  0x1f   : >> { %596 = vset.pattern.permute.xlu1 %v699_v5  ;;  %594 = vset.pattern.permute.xlu0 %v700_v6  ;;  %s215_s6 = sadd.s32 1, %s694_s6  }
  0x20   : >> { %250 = vperm.xlu1 %596, %v831_v3   ;;  %234 = vperm.xlu0 %594, %v831_v3   ;;  %p212_p12 = scmp.ge.s32.totalorder %s215_s6, 4  }
  0x21   : > { %s887_s6 = scalar_lea.sflag (%p212_p12), [#allocation4], %s185_s23 }
  0x23   : >> { %v838_v7 = vld [vmem:[#allocation2] sm:$0xff] }
  0x24   : >> { %597 = vset.pattern.permute.xlu0 %v701_v8  ;;  %231 = vrot.lane.b32.xlu1 %v838_v7, %s702_s16  ;;  %s721_s16 = smov 104  }
  0x25   : >> { %258 = vperm.xlu0 %597, %v831_v3   ;;  %598 = vset.pattern.permute.xlu1 %v703_v9 }
  0x28   : >> { %239 = vrot.lane.b32.xlu1 %v838_v7, %s704_s18  ;;  %s723_s18 = smov 103  }
  0x29   : >> { %247 = vrot.lane.b32.xlu0 %v838_v7, %s705_s20  ;;  %s725_s20 = smov 101  }
  0x2a   : >> { %609 = vset.pattern.permute.xlu0 %v706_v10 }
  0x2c   : >> { %266 = vperm.xlu1 %598, %v831_v3  }
  0x2d   : >> { %255 = vrot.lane.b32.xlu0 %v838_v7, %s707_s25  ;;  %s727_s25 = smov 102  }
  0x30   : >> { %599 = vset.pattern.permute.xlu1 %v708_v11 }
  0x31   : >> { %274 = vperm.xlu1 %599, %v831_v3   ;;  %263 = vrot.lane.b32.xlu0 %v838_v7, %s709_s26  ;;  %s351_s26 = scalar_lea.vmem %s187_s5, %s825_s7 [#allocation3]  ;;  %s369_s7 = sshll.u32 (%p212_p12), %s187_s5, 4  ;;  %s883_s7 = int_to_ptr.vmem [resolvable:$true] %s369_s7 }
  0x32   : > { %s610_s29 = scalar_lea.vmem (%p212_p12), %s883_s7, 512 }
  0x33   : > { %p611_p13 = scmp.ne.s32.totalorder (%p212_p12), %s883_s7, %s610_s29 }
  0x35   : >> { %600 = vset.pattern.permute.xlu1 %v710_v12  ;;  %271 = vrot.lane.b32.xlu0 %v838_v7, %s711_s27  ;;  %s495_s27 = sshll.u32 (%p212_p12), %s682_s12, 9  ;;  %p612_p0 = pnand (%p212_p12), %p611_p13, %p786_p4 }
  0x36   : >> { %282 = vperm.xlu1 %600, %v831_v3   ;;  %s728_s12 = smov (%p212_p12), [#allocation3]  }
  0x37   : > { %p613_p1 = pneg (%p212_p12), %p612_p0  ;;  %s614_s4 = sshll.u32 (%p212_p12), %s728_s12, 4  ;;  %s615_s4 = int_to_ptr.vmem [resolvable:$false] %s614_s4 }
  0x38   : > { %p617_p2 = scmp.lt.s32.totalorder (%p212_p12), %s883_s7, %s615_s4 }
  0x39   : >> { %279 = vrot.lane.b32.xlu0 %v838_v7, %s712_s28 }
  0x3a   : >> { %601 = vset.pattern.permute.xlu1 %v713_v13 }
  0x3b   : >> { %290 = vperm.xlu1 %601, %v831_v3  }
  0x3d   : >> { %287 = vrot.lane.b32.xlu0 %v838_v7, %s714_s30 }
  0x3f   : >> { %602 = vset.pattern.permute.xlu1 %v715_v14 }
  0x40   : >> { %298 = vperm.xlu1 %602, %v831_v3  }
  0x41   : >> { %295 = vrot.lane.b32.xlu0 %v838_v7, %s716_s3  ;;  %s879_s3 = scalar_lea.hbm (%p212_p12), %s934_s2, %s495_s27 }
  0x44   : >> { %603 = vset.pattern.permute.xlu1 %v717_v15 }
  0x45   : >> { %306 = vperm.xlu1 %603, %v831_v3   ;;  %303 = vrot.lane.b32.xlu0 %v838_v7, %s718_s8  ;;  %s616_s8 = scalar_lea.vmem (%p212_p12), %s615_s4, 1024 }
  0x46   : > { %p618_p3 = scmp.lt.s32.totalorder (%p212_p12), %s616_s8, %s610_s29 }
  0x48   : > { %p619_p5 = por (%p212_p12), %p618_p3, %p617_p2 }
  0x49   : >> { %604 = vset.pattern.permute.xlu1 %v719_v16  ;;  %311 = vrot.lane.b32.xlu0 %v838_v7, %s720_s15 }
  0x4a   : >> { %314 = vperm.xlu1 %604, %v831_v3   ;;  %p620_p6 = pnand (%p212_p12), %p619_p5, %p613_p1 }
  0x4d   : >> { %319 = vrot.lane.b32.xlu0 %v838_v7, %s721_s16 }
  0x4e   : >> { %605 = vset.pattern.permute.xlu1 %v722_v17 }
  0x4f   : >> { %322 = vperm.xlu1 %605, %v831_v3  }
  0x51   : >> { %327 = vrot.lane.b32.xlu0 %v838_v7, %s723_s18 }
  0x53   : >> { %606 = vset.pattern.permute.xlu1 %v724_v18 }
  0x54   : >> { %330 = vperm.xlu1 %606, %v831_v3  }
  0x55   : >> { %343 = vrot.lane.b32.xlu0 %v838_v7, %s725_s20 }
  0x58   : >> { %607 = vset.pattern.permute.xlu1 %v726_v19 }
  0x59   : >> { %338 = vperm.xlu1 %607, %v831_v3  }
  0x5d   : >> { %608 = vset.pattern.permute.xlu1 %v706_v10 }
  0x5e   : >> { %346 = vperm.xlu1 %608, %v831_v3  }
  0x62   : >> { %335 = vrot.lane.b32.xlu1 %v838_v7, %s727_s25 }
  0x96   : >> { %v243_v20 = vpop.permute.xlu1 %242  ;;  %v227_v21 = vpop.permute.xlu0 %226 }
  0x97   : >> { %v229_v38 = vmul.f32 %v227_v21, %v838_v7 }
  0x9b   : >> { %v251_v22 = vpop.permute.xlu1 %250  ;;  %v235_v23 = vpop.permute.xlu0 %234 }
  0x9f   : >> { %v232_v24 = vpop.permute.xlu1 %231 }
  0xa0   : >> { %v259_v25 = vpop.permute.xlu0 %258  ;;  %v237_v39 = vmul.f32 %v235_v23, %v232_v24 }
  0xa2   : >> { %v238_v43 = vadd.f32 %v237_v39, %v229_v38 }
  0xa3   : >> { %v240_v26 = vpop.permute.xlu1 %239 }
  0xa4   : >> { %v248_v27 = vpop.permute.xlu0 %247  ;;  %v245_v41 = vmul.f32 %v243_v20, %v240_v26 }
  0xa5   : >> { %v253_v45 = vmul.f32 %v251_v22, %v248_v27 }
  0xa6   : >> { %v246_v44 = vadd.f32 %v245_v41, %v238_v43 }
  0xa7   : >> { %v267_v28 = vpop.permute.xlu1 %266 }
  0xa8   : >> { %v256_v29 = vpop.permute.xlu0 %255  ;;  %v254_v48 = vadd.f32 %v253_v45, %v246_v44 }
  0xa9   : >> { %v261_v49 = vmul.f32 %v259_v25, %v256_v29 }
  0xab   : >> { %v262_v53 = vadd.f32 %v261_v49, %v254_v48 }
  0xac   : >> { %v264_v30 = vpop.permute.xlu0 %263  ;;  %v275_v31 = vpop.permute.xlu1 %274 }
  0xad   : >> { %v269_v50 = vmul.f32 %v267_v28, %v264_v30 }
  0xaf   : >> { %v270_v55 = vadd.f32 %v269_v50, %v262_v53 }
  0xb0   : >> { %v272_v32 = vpop.permute.xlu0 %271 }
  0xb1   : >> { %v283_v33 = vpop.permute.xlu1 %282  ;;  %v277_v54 = vmul.f32 %v275_v31, %v272_v32 }
  0xb3   : >> { %v278_v58 = vadd.f32 %v277_v54, %v270_v55 }
  0xb4   : >> { %v280_v34 = vpop.permute.xlu0 %279 }
  0xb5   : >> { %v285_v56 = vmul.f32 %v283_v33, %v280_v34 }
  0xb6   : >> { %v291_v35 = vpop.permute.xlu1 %290 }
  0xb7   : >> { %v286_v61 = vadd.f32 %v285_v56, %v278_v58 }
  0xb8   : >> { %v288_v36 = vpop.permute.xlu0 %287 }
  0xb9   : >> { %v293_v59 = vmul.f32 %v291_v35, %v288_v36 }
  0xbb   : >> { %v299_v37 = vpop.permute.xlu1 %298  ;;  %v294_v63 = vadd.f32 %v293_v59, %v286_v61 }
  0xbc   : >> { %v296_v40 = vpop.permute.xlu0 %295 }
  0xbd   : >> { %v301_v62 = vmul.f32 %v299_v37, %v296_v40 }
  0xbf   : >> { %v302_v2 = vadd.f32 %v301_v62, %v294_v63 }
  0xc0   : >> { %v307_v42 = vpop.permute.xlu1 %306  ;;  %v304_v46 = vpop.permute.xlu0 %303 }
  0xc1   : >> { %v309_v0 = vmul.f32 %v307_v42, %v304_v46 }
  0xc3   : >> { %v310_v5 = vadd.f32 %v309_v0, %v302_v2 }
  0xc4   : >> { %v312_v52 = vpop.permute.xlu0 %311 }
  0xc5   : >> { %v315_v47 = vpop.permute.xlu1 %314 }
  0xc6   : >> { %v317_v3 = vmul.f32 %v315_v47, %v312_v52 }
  0xc8   : >> { %v320_v60 = vpop.permute.xlu0 %319  ;;  %v318_v8 = vadd.f32 %v317_v3, %v310_v5 }
  0xca   : >> { %v323_v51 = vpop.permute.xlu1 %322 }
  0xcb   : >> { %v325_v6 = vmul.f32 %v323_v51, %v320_v60 }
  0xcc   : >> { %v328_v4 = vpop.permute.xlu0 %327 }
  0xcd   : >> { %v326_v10 = vadd.f32 %v325_v6, %v318_v8 }
  0xcf   : >> { %v331_v57 = vpop.permute.xlu1 %330 }
  0xd0   : >> { %v333_v9 = vmul.f32 %v331_v57, %v328_v4  ;;  %v344_v11 = vpop.permute.xlu0 %343 }
  0xd2   : >> { %v334_v13 = vadd.f32 %v333_v9, %v326_v10 }
  0xd4   : >> { %v339_v1 = vpop.permute.xlu1 %338 }
  0xd9   : >> { %v347_v7 = vpop.permute.xlu1 %346 }
  0xda   : >> { %v349_v15 = vmul.f32 %v347_v7, %v344_v11 }
  0xdd   : >> { %v336_v12 = vpop.permute.xlu1 %335 }
  0xde   : >> { %v341_v14 = vmul.f32 %v339_v1, %v336_v12 }
  0xe0   : >> { %v342_v16 = vadd.f32 %v341_v14, %v334_v13  ;;  %214 = sbr.rel (!%p212_p12) target bundleno = 24 (0x18), region = 76 }
  0xe2   : >> { %v350_v17 = vadd.f32 %v349_v15, %v342_v16 }
  0xe4   : >> { %352 = vst.msk [vmem:[%s351_s26] sm:$0xff] %vm219_vm0, %v350_v17 }
  0xe5   : > { %623 = shalt.err (!%p620_p6)
}
  0xe6   : > { %s624_s23 = scalar_lea.hbm %s879_s3, 512  ;;  %s628_s15 = scalar_lea.hbm %s934_s2, 1024 }
  0xe7   : > { %p625_p7 = scmp.ne.s32.totalorder %s879_s3, %s624_s23  ;;  %p629_p11 = scmp.lt.s32.totalorder %s879_s3, %s934_s2 }
  0xe8   : > { %p630_p12 = scmp.lt.s32.totalorder %s628_s15, %s624_s23 }
  0xe9   : > { %p626_p9 = pnand %p625_p7, %p786_p4 }
  0xea   : > { %p631_p13 = por %p630_p12, %p629_p11 }
  0xeb   : > { %p627_p10 = pneg %p626_p9 }
  0xed   : > { %p632_p0 = pnand %p631_p13, %p627_p10 }
  0xef   : > { %635 = shalt.err (!%p632_p0)
}
  0xf0   : > { %s729_s20 = smov 128   ;;  %s730_s25 = smov 8  }
  0xf1   : > { %496 = dma.vmem_to_hbm [thread:$0]  (%p786_p4), %s883_s7, 512, %s879_s3, %s887_s6, %s729_s20, %s729_s20, %s730_s25  }
  0xf2 PF: > { %p502_p1 = scmp.ge.s32.totalorder %s690_s14, 2  ;;  %s384_s26 = sand.u32 1, %s670_s9  }
  0xf3   : > { %s385_s27 = scalar_lea.sflag [#allocation4], %s384_s26 }
  0xf4   : > { %p499_p2 = pnand %p502_p1, %p793_p8 }
  0xf6   : > { %p500_p3 = pneg %p499_p2 }
  0xf8   : > { %665 = dma.done.wait (%p500_p3), %s385_s27, 512  }
  0xf9   : > { %667 = vsyncadd (%p500_p3), %s385_s27, 4294966784  ;;  %s15_s14 = sadd.s32 1, %s690_s14   ;;  %s937_s9 = smov %s674_s10 }
  0xfa   : > { %p12_p5 = scmp.ge.s32.totalorder %s15_s14, 4   ;;  %s938_s10 = smov %s678_s11 }
  0xfb   : > { %s939_s11 = smov %s799_s22  ;;  %s940_s12 = smov %s686_s13 }
  0xfc   : > { %s941_s13 = smov %s943_s17  ;;  %14 = sbr.rel (!%p12_p5) target bundleno = 4 (0x4), region = 87 }
 0x101   :  { %390 = vsyncpa [#allocation4], 1 }
 0x102   :  { %392 = vsyncpa [#allocation4 + $0x1], 1 }

</bundles_post_ra>
